<compile_context>
chip_gen: v5e
topology: v5e:2x2
jax: 0.10.0
libtpu: 0.0.40
codegen_flags: <defaults>
</compile_context>

<pallas_src>
import functools
import math

import jax
import jax.numpy as jnp
from jax.experimental import pallas as pl
from jax.experimental.pallas import tpu as pltpu


def _round_up(x, m):
    return ((x + m - 1) // m) * m


def _matmul_kernel(x_ref, y_ref, o_ref, acc_ref, *, k_axis):
    """Tiled matmul body: f32 accumulator, init/finalize gated by pl.when.

    Works for both the 2-D grid (k_axis=2) and the batched grid (k_axis=3,
    batch dim squeezed out of the refs by the BlockSpecs).
    """
    k = pl.program_id(k_axis)

    @pl.when(k == 0)
    def _init():
        acc_ref[...] = jnp.zeros_like(acc_ref)

    acc_ref[...] += jnp.dot(
        x_ref[...], y_ref[...], preferred_element_type=jnp.float32
    )

    @pl.when(k == pl.num_programs(k_axis) - 1)
    def _store():
        # Single f32 -> out-dtype cast, only in the epilogue.
        o_ref[...] = acc_ref[...].astype(o_ref.dtype)


def _fit_tiles(M, N, K, tm, tn, tk):
    # Alignment:
    #   sublane axes (tm; tk as rows of y)  -> multiple of 8
    #   lane axes    (tk as cols of x; tn)  -> multiple of 128 (lane-dense st)
    tm = min(tm, _round_up(M, 8))
    tn = min(tn, _round_up(N, 128))
    tk = min(tk, _round_up(K, 128))
    return tm, tn, tk


_VMEM_LIMIT = 32 * 1024 * 1024  # safe scoped-VMEM budget on v5e/v6e/v7x


def _matmul_2d(x, y, out_dtype, tm, tn, tk):
    M, K = x.shape
    _, N = y.shape
    tm, tn, tk = _fit_tiles(M, N, K, tm, tn, tk)

    Mp, Kp, Np = _round_up(M, tm), _round_up(K, tk), _round_up(N, tn)
    xp = x if (Mp == M and Kp == K) else jnp.pad(x, ((0, Mp - M), (0, Kp - K)))
    yp = y if (Kp == K and Np == N) else jnp.pad(y, ((0, Kp - K), (0, Np - N)))

    grid = (Mp // tm, Np // tn, Kp // tk)  # reduction axis last

    cost = pl.CostEstimate(
        flops=2 * M * N * K,
        bytes_accessed=(xp.size * xp.dtype.itemsize
                        + yp.size * yp.dtype.itemsize
                        + Mp * Np * jnp.dtype(out_dtype).itemsize),
        transcendentals=0,
    )

    out = pl.pallas_call(
        functools.partial(_matmul_kernel, k_axis=2),
        out_shape=jax.ShapeDtypeStruct((Mp, Np), out_dtype),
        grid_spec=pltpu.PrefetchScalarGridSpec(
            num_scalar_prefetch=0,
            grid=grid,
            in_specs=[
                pl.BlockSpec((tm, tk), lambda i, j, k: (i, k)),
                pl.BlockSpec((tk, tn), lambda i, j, k: (k, j)),
            ],
            out_specs=pl.BlockSpec((tm, tn), lambda i, j, k: (i, j)),
            scratch_shapes=[pltpu.VMEM((tm, tn), jnp.float32)],
        ),
        compiler_params=pltpu.CompilerParams(
            dimension_semantics=("parallel", "parallel", "arbitrary"),
            vmem_limit_bytes=_VMEM_LIMIT,
        ),
        cost_estimate=cost,
    )(xp, yp)

    if (Mp, Np) != (M, N):
        out = out[:M, :N]
    return out


def _matmul_batched(x, y, out_dtype, tm, tn, tk):
    """x: (B, M, K), y: (B, K, N) -> (B, M, N). Batch is a leading grid axis."""
    B, M, K = x.shape
    _, _, N = y.shape
    tm, tn, tk = _fit_tiles(M, N, K, tm, tn, tk)

    Mp, Kp, Np = _round_up(M, tm), _round_up(K, tk), _round_up(N, tn)
    xp = x if (Mp == M and Kp == K) else jnp.pad(
        x, ((0, 0), (0, Mp - M), (0, Kp - K)))
    yp = y if (Kp == K and Np == N) else jnp.pad(
        y, ((0, 0), (0, Kp - K), (0, Np - N)))

    grid = (B, Mp // tm, Np // tn, Kp // tk)  # reduction axis last

    cost = pl.CostEstimate(
        flops=2 * B * M * N * K,
        bytes_accessed=(xp.size * xp.dtype.itemsize
                        + yp.size * yp.dtype.itemsize
                        + B * Mp * Np * jnp.dtype(out_dtype).itemsize),
        transcendentals=0,
    )

    # Batch dim uses block size 1 and is squeezed out of the kernel refs
    # (block dim `None`), so the 2-D kernel body is reused unchanged.
    out = pl.pallas_call(
        functools.partial(_matmul_kernel, k_axis=3),
        out_shape=jax.ShapeDtypeStruct((B, Mp, Np), out_dtype),
        grid_spec=pltpu.PrefetchScalarGridSpec(
            num_scalar_prefetch=0,
            grid=grid,
            in_specs=[
                pl.BlockSpec((None, tm, tk), lambda b, i, j, k: (b, i, k)),
                pl.BlockSpec((None, tk, tn), lambda b, i, j, k: (b, k, j)),
            ],
            out_specs=pl.BlockSpec((None, tm, tn), lambda b, i, j, k: (b, i, j)),
            scratch_shapes=[pltpu.VMEM((tm, tn), jnp.float32)],
        ),
        compiler_params=pltpu.CompilerParams(
            dimension_semantics=("parallel", "parallel", "parallel",
                                 "arbitrary"),
            vmem_limit_bytes=_VMEM_LIMIT,
        ),
        cost_estimate=cost,
    )(xp, yp)

    if (Mp, Np) != (M, N):
        out = out[:, :M, :N]
    return out


def matmul_epsilon(x, y, epsilon=1e-6, *, tm=256, tn=256, tk=512,
                   min_flops=1 << 20):
    """Forward of MatMulEpsilon: out = matmul(x, y).

    epsilon only matters for the custom LRP backward rule and is ignored in
    the forward pass.  Output dtype follows jnp.result_type(x, y); the MXU
    accumulation is always f32.
    """
    del epsilon  # forward is epsilon-independent
    # TODO(synk): custom LRP backward rule (stabilize + relevance propagation)
    # is autograd machinery, not part of the forward kernel.
    out_dtype = jnp.result_type(x.dtype, y.dtype)

    if x.ndim < 2 or y.ndim < 2:
        # 1-D vector operands: fall back to jnp (torch.matmul vector rules).
        return jnp.matmul(x, y, preferred_element_type=jnp.float32).astype(out_dtype)

    M, K = x.shape[-2], x.shape[-1]
    K2, N = y.shape[-2], y.shape[-1]
    assert K == K2, "inner dimensions must match"

    batch_x = x.shape[:-2]
    batch_y = y.shape[:-2]
    batch = jnp.broadcast_shapes(batch_x, batch_y)
    total_flops = 2 * max(1, math.prod(batch)) * M * N * K

    # Tiny problems: per-grid-step overhead + DMA setup dominates; XLA's
    # fused dot wins, so skip Pallas below a FLOP threshold.
    if total_flops < min_flops:
        return jnp.matmul(x, y, preferred_element_type=jnp.float32).astype(out_dtype)

    if y.ndim == 2:
        # Common LRP case: activations (..., K) @ weight (K, N).
        # Collapse leading dims of x into M -> one big lane-dense 2-D matmul.
        x2 = x.reshape((-1, K)) if x.ndim != 2 else x
        out = _matmul_2d(x2, y, out_dtype, tm, tn, tk)
        return out.reshape(batch_x + (M, N)) if x.ndim != 2 else out

    # Fully batched (both operands have batch dims): broadcast, flatten batch.
    xb = jnp.broadcast_to(x, batch + (M, K)).reshape((-1, M, K))
    yb = jnp.broadcast_to(y, batch + (K, N)).reshape((-1, K, N))
    out = _matmul_batched(xb, yb, out_dtype, tm, tn, tk)
    return out.reshape(batch + (M, N))


if __name__ == "__main__":
    key = jax.random.PRNGKey(0)
    k1, k2, k3, k4, k5, k6, k7, k8 = jax.random.split(key, 8)

    # Case 1: tiny module-like shape -> dispatcher falls back to jnp.matmul
    # (Pallas would be pure overhead at 8x32x16).
    x0 = jax.random.normal(k1, (8, 32), dtype=jnp.float32)
    y0 = jax.random.normal(k2, (32, 16), dtype=jnp.float32)
    o0 = jax.block_until_ready(matmul_epsilon(x0, y0))
    assert o0.shape == (8, 16)
    assert jnp.allclose(o0, x0 @ y0, atol=1e-5, rtol=1e-5)

    # Case 2: aligned 2-D shape, tiles chosen so the grid is (2, 2, 2)
    # -> exercises the pipelined, accumulator-based Pallas path.
    x1 = jax.random.normal(k3, (256, 512), dtype=jnp.float32)
    y1 = jax.random.normal(k4, (512, 256), dtype=jnp.float32)
    o1 = jax.block_until_ready(matmul_epsilon(x1, y1, tm=128, tn=128, tk=256))
    r1 = x1 @ y1
    assert o1.shape == r1.shape and o1.dtype == r1.dtype
    assert jnp.allclose(o1, r1, atol=1e-3, rtol=1e-3)

    # Case 3: N-D activations @ 2-D weight (typical LRP linear layer)
    # -> exercises the collapse-to-2-D path + pad-to-lane-dense + slice.
    x2 = jax.random.normal(k5, (2, 4, 64, 96), dtype=jnp.float32)
    y2 = jax.random.normal(k6, (96, 48), dtype=jnp.float32)
    o2 = jax.block_until_ready(matmul_epsilon(x2, y2))
    r2 = jnp.matmul(x2, y2)
    assert o2.shape == r2.shape
    assert jnp.allclose(o2, r2, atol=1e-3, rtol=1e-3)

    # Case 4: fully batched matmul (e.g. attention scores in LRP graphs)
    # -> exercises the squeezed-batch-axis Pallas path with padding.
    x3 = jax.random.normal(k7, (3, 160, 224), dtype=jnp.float32)
    y3 = jax.random.normal(k8, (3, 224, 130), dtype=jnp.float32)
    o3 = jax.block_until_ready(matmul_epsilon(x3, y3))
    r3 = jnp.matmul(x3, y3)
    assert o3.shape == r3.shape
    assert jnp.allclose(o3, r3, atol=1e-3, rtol=1e-3)

    print("KERNEL_OK")
</pallas_src>

<mosaic_0001>
module attributes {stable_mosaic.version = 11 : i64} {
  func.func @_matmul_kernel(%arg0: i32, %arg1: i32, %arg2: i32, %arg3: memref<128x256xf32, #tpu.memory_space<vmem>>, %arg4: memref<256x128xf32, #tpu.memory_space<vmem>>, %arg5: memref<128x128xf32, #tpu.memory_space<vmem>>, %arg6: memref<128x128xf32, #tpu.memory_space<vmem>>) attributes {dimension_semantics = [#tpu.dimension_semantics<parallel>, #tpu.dimension_semantics<parallel>, #tpu.dimension_semantics<arbitrary>], iteration_bounds = array<i64: 2, 2, 2>, scalar_prefetch = 0 : i64, scratch_operands = 1 : i64, tpu.core_type = #tpu.core_type<tc>, window_params = [{transform_indices = @transform_0, window_bounds = array<i64: 128, 256>}, {transform_indices = @transform_1, window_bounds = array<i64: 256, 128>}, {transform_indices = @transform_2, window_bounds = array<i64: 128, 128>}]} {
    %c0_i32 = arith.constant 0 : i32
    %0 = arith.cmpi eq, %arg2, %c0_i32 : i32
    %1 = arith.extui %0 : i1 to i32
    %c0_i32_0 = arith.constant 0 : i32
    %2 = arith.cmpi ne, %1, %c0_i32_0 : i32
    scf.if %2 {
      %cst_9 = arith.constant 0.000000e+00 : f32
      %12 = vector.broadcast %cst_9 : f32 to vector<128x128xf32>
      %c0_10 = arith.constant 0 : index
      %c0_11 = arith.constant 0 : index
      %13 = vector.load %arg6[%c0_10, %c0_11] : memref<128x128xf32, #tpu.memory_space<vmem>>, vector<128x128xf32>
      tpu.vector_store %arg6[%c0_10, %c0_11], %12 {strides = array<i32>} : memref<128x128xf32, #tpu.memory_space<vmem>>, vector<128x128xf32>,
    } else {
    }
    %c0 = arith.constant 0 : index
    %c0_1 = arith.constant 0 : index
    %3 = vector.load %arg6[%c0, %c0_1] : memref<128x128xf32, #tpu.memory_space<vmem>>, vector<128x128xf32>
    %c0_2 = arith.constant 0 : index
    %c0_3 = arith.constant 0 : index
    %4 = vector.load %arg3[%c0_2, %c0_3] : memref<128x256xf32, #tpu.memory_space<vmem>>, vector<128x256xf32>
    %c0_4 = arith.constant 0 : index
    %c0_5 = arith.constant 0 : index
    %5 = vector.load %arg4[%c0_4, %c0_5] : memref<256x128xf32, #tpu.memory_space<vmem>>, vector<256x128xf32>
    %cst = arith.constant dense<0.000000e+00> : vector<128x128xf32>
    %6 = tpu.matmul %4, %5, %cst {dimension_numbers = #tpu.dot_dimension_numbers<[1], [0], [0], [1], [0, 0, 1, 1], [], []>} : vector<128x256xf32>, vector<256x128xf32>, vector<128x128xf32> -> vector<128x128xf32>
    %7 = arith.addf %3, %6 : vector<128x128xf32>
    %c0_6 = arith.constant 0 : index
    %c0_7 = arith.constant 0 : index
    %8 = vector.load %arg6[%c0_6, %c0_7] : memref<128x128xf32, #tpu.memory_space<vmem>>, vector<128x128xf32>
    tpu.vector_store %arg6[%c0_6, %c0_7], %7 {strides = array<i32>} : memref<128x128xf32, #tpu.memory_space<vmem>>, vector<128x128xf32>,
    %c1_i32 = arith.constant 1 : i32
    %9 = arith.cmpi eq, %arg2, %c1_i32 : i32
    %10 = arith.extui %9 : i1 to i32
    %c0_i32_8 = arith.constant 0 : i32
    %11 = arith.cmpi ne, %10, %c0_i32_8 : i32
    scf.if %11 {
      %c0_9 = arith.constant 0 : index
      %c0_10 = arith.constant 0 : index
      %12 = vector.load %arg6[%c0_9, %c0_10] : memref<128x128xf32, #tpu.memory_space<vmem>>, vector<128x128xf32>
      %c0_11 = arith.constant 0 : index
      %c0_12 = arith.constant 0 : index
      %13 = vector.load %arg5[%c0_11, %c0_12] : memref<128x128xf32, #tpu.memory_space<vmem>>, vector<128x128xf32>
      tpu.vector_store %arg5[%c0_11, %c0_12], %12 {strides = array<i32>} : memref<128x128xf32, #tpu.memory_space<vmem>>, vector<128x128xf32>,
    } else {
    }
    return
  }
  func.func @transform_0(%arg0: i32, %arg1: i32, %arg2: i32) -> (i32, i32) {
    %c0_i32 = arith.constant 0 : i32
    return %arg0, %arg2 : i32, i32
  }
  func.func @transform_1(%arg0: i32, %arg1: i32, %arg2: i32) -> (i32, i32) {
    %c0_i32 = arith.constant 0 : i32
    return %arg2, %arg1 : i32, i32
  }
  func.func @transform_2(%arg0: i32, %arg1: i32, %arg2: i32) -> (i32, i32) {
    %c0_i32 = arith.constant 0 : i32
    return %arg0, %arg1 : i32, i32
  }
}

</mosaic_0001>

<bundles_post_ra>
// kernel: tpu_custom_call.1
= control target key start
LH: loop header
LB: loop body
LE: loop exit
PB: predicated region body
PF: predicated region fallthrough
CT: control target
= control target key end

     0   :  { %s1531_s0 = inlined_call_operand.hbm [shape: f32[256,512], index: 0, kind: input, shape index: {}]   ;;  %s1532_s1 = inlined_call_operand.hbm [shape: f32[512,256], index: 1, kind: input, shape index: {}]   ;;  %s1533_s2 = inlined_call_operand.hbm [shape: f32[256,256], index: 2, kind: output, shape index: {}]  }
   0x1   :  { %1543 = sst [smem:[#allocation23_spill]] %s1531_s0 }
   0x2   :  { %1544 = sst [smem:[#allocation24_spill]] %s1533_s2 }
   0x3   :  { %7 = vsyncpa [#allocation4], 0 }
   0x4   :  { %9 = vsyncpa [#allocation4 + $0x1], 0 }
   0x5   :  { %10 = vsyncpa [#allocation7], 0 }
   0x6   :  { %12 = vsyncpa [#allocation7 + $0x1], 0 }
   0x7   :  { %13 = vsyncpa [#allocation5], 0 }
   0x8   :  { %15 = vsyncpa [#allocation5 + $0x1], 0  ;;  %s1144_s9 = smov 0   ;;  %s1146_s10 = smov 0  }
   0x9   :  { %s1148_s11 = smov 0   ;;  %s1150_s12 = smov 0  }
   0xa   :  { %s1152_s13 = smov 0   ;;  %s1154_s14 = smov 0  }
   0xb   :  { %s1156_s15 = smov 0   ;;  %s1158_s16 = smov 0  }
   0xc   :  { %s1160_s17 = smov 0   ;;  %s1162_s18 = smov 0  }
   0xd   :  { %s1164_s19 = smov 0   ;;  %s1166_s20 = smov 0  }
   0xe   :  { %s1168_s21 = smov 0   ;;  %s1170_s22 = smov 0  }
   0xf   :  { %s1172_s23 = smov 0   ;;  %s1174_s24 = smov 0  }
  0x10 LB: > { %1545 = sst [smem:[#allocation12_spill]] %s1090_s17  ;;  %s676_s25 = sadd.s32 4294967295, %s1118_s24   ;;  %s1118_s24 = sphi %s1174_s24, %s21_s24   ;;  %s1114_s23 = sphi %s1172_s23, %s1599_s23   ;;  %s1110_s22 = sphi %s1170_s22, %s1598_s22   ;;  %s1106_s21 = sphi %s1168_s21, %s1597_s21   ;;  %s1102_s20 = sphi %s1166_s20, %s1596_s20   ;;  %s1098_s19 = sphi %s1164_s19, %s1595_s19   ;;  %s1094_s18 = sphi %s1162_s18, %s1594_s18   ;;  %s1090_s17 = sphi %s1160_s17, %s1580_s17   ;;  %s1086_s16 = sphi %s1158_s16, %s1593_s16   ;;  %s1082_s15 = sphi %s1156_s15, %s1592_s15   ;;  %s1078_s14 = sphi %s1154_s14, %s1591_s14   ;;  %s1074_s13 = sphi %s1152_s13, %s1590_s13   ;;  %s1070_s12 = sphi %s1150_s12, %s1589_s12   ;;  %s1066_s11 = sphi %s1148_s11, %s1588_s11   ;;  %s1062_s10 = sphi %s1146_s10, %s1587_s10   ;;  %s1058_s9 = sphi %s1144_s9, %s1585_s9  }
  0x11   : > { %1546 = sst [smem:[#allocation13_spill]] %s1094_s18  ;;  %s33_s26 = sadd.s32 1, %s1106_s21 }
  0x12   : > { %1547 = sst [smem:[#allocation14_spill]] %s1098_s19  ;;  %p1224_p0 = scmp.ge.s32.totalorder %s33_s26, 2 }
  0x13   : > { %1548 = sst [smem:[#allocation15_spill]] %s1102_s20  ;;  %p56_p1 = scmp.ne.s32.totalorder %s1090_s17, %s1086_s16 }
  0x14   : > { %1549 = sst [smem:[#allocation16_spill]] %s1114_s23  ;;  %s1601_s26 = smov (%p1224_p0, %s33_s26), 0 }
  0x15   : > { %1551 = sst [smem:[#allocation17_spill]] %s1601_s26  ;;  %p57_p2 = scmp.eq.s32.totalorder %s1118_s24, 0 }
  0x16   : > { %p62_p3 = scmp.ne.s32.totalorder %s1086_s16, %s1082_s15  ;;  %s1240_s30 = ssub.s32 %s1106_s21, %s1601_s26 }
  0x17   : > { %p1242_p4 = scmp.eq.s32.totalorder %s676_s25, 0  ;;  %p1248_p5 = por %p57_p2, %p56_p1 }
  0x18   : > { %p1252_p6 = scmp.eq.s32.totalorder %s676_s25, 7  ;;  %p753_p8 = scmp.lt.s32.totalorder %s1118_s24, 8 }
  0x19   : > { %p1258_p7 = por %p1242_p4, %p62_p3  ;;  %s142_s7 = sand.u32 1, %s1090_s17  }
  0x1a   : > { %s680_s8 = sshll.u32 %s142_s7, 8  ;;  %s682_s15 = sshll.u32 %s1106_s21, 1 }
  0x1b   : > { %s1555_s6 = scalar_select %p1258_p7, 1, 0 }
  0x1c   : > { %s701_s29 = sshll.u32 %s1114_s23, 6  ;;  %s146_s28 = scalar_lea.vmem [#allocation3], %s680_s8 }
  0x1d   : > { %1556 = sst [smem:[#allocation18_spill]] %s1555_s6  ;;  %s157_s26 = sshll.u32 %s146_s28, 4  ;;  %s158_s26 = int_to_ptr.vmem [resolvable:$true] %s157_s26 }
  0x1e   : > { %s152_s2 = sadd.s32 %s701_s29, %s682_s15  ;;  %p743_p9 = pnand %p753_p8, %p1248_p5 }
  0x1f   : > { %s684_s25 = sshll.u32 %s152_s2, 3  ;;  %s1557_s0 = sld [smem:[#allocation23_spill]] }
  0x20   : > { %p689_p10 = scmp.ge.s32.totalorder %s1118_s24, 1  ;;  %s143_s28 = scalar_lea.sflag [#allocation4], %s142_s7 }
  0x21   : > { %s1120_s29 = smov 512   ;;  %s1538_s2 = smov 256  }
  0x22   : > { %s1122_s4 = smov 16   ;;  %p189_p11 = scmp.lt.s32.totalorder %s1118_s24, 9 }
  0x23   : > { %s677_s19 = sadd.s32 4294967294, %s1118_s24   ;;  %s36_s20 = sadd.s32 1, %s1110_s22 }
  0x24   : > { %p1276_p12 = pnand %p689_p10, %p189_p11  ;;  %s1603_s20 = smov (!%p1224_p0, %s36_s20), %s1110_s22 }
  0x25   : > { %s154_s18 = scalar_lea.hbm %s1557_s0, %s684_s25  ;;  %s77_s7 = sadd.s32 1, %s1078_s14 }
  0x26   : > { %s155_s6 = sshll.u32 %s154_s18, 4  ;;  %p84_p13 = scmp.ne.s32.totalorder %s1078_s14, %s1074_s13  ;;  %s156_s6 = int_to_ptr.hbm [resolvable:$true] %s155_s6 }
  0x27   : > { %745 = dma.hbm_to_vmem [thread:$0]  (!%p743_p9), %s156_s6, 4096, %s158_s26, %s143_s28, %s1120_s29, %s1538_s2, %s1122_s4  }
  0x28   : > { %p38_p1 = scmp.ge.s32.totalorder %s1603_s20, 2  ;;  %p90_p3 = scmp.ne.s32.totalorder %s1074_s13, %s1070_s12 }
  0x29   : > { %p1292_p5 = por %p84_p13, %p57_p2  ;;  %s105_s6 = sadd.s32 1, %s1066_s11 }
  0x2a   : > { %s1605_s20 = smov (%p38_p1, %s1603_s20), 0  ;;  %s1561_s8 = sadd.s32 1, %s1114_s23 }
  0x2b   : > { %1560 = sst [smem:[#allocation19_spill]] %s1605_s20  ;;  %s1607_s8 = smov (!%p38_p1, %s1561_s8), %s1114_s23 }
  0x2c   : > { %s73_s27 = ssub.s32 %s1110_s22, %s1605_s20  ;;  %p1306_p0 = por %p90_p3, %p1242_p4 }
  0x2d   : > { %p42_p2 = scmp.ge.s32.totalorder %s1607_s8, 2  ;;  %s74_s12 = sor.u32 %s73_s27, %s1240_s30 }
  0x2e   : > { %p75_p9 = scmp.eq.s32.totalorder %s74_s12, 0  ;;  %p115_p10 = scmp.ne.s32.totalorder %s1066_s11, %s1062_s10 }
  0x2f   : > { %s1609_s8 = smov (%p42_p2, %s1607_s8), 0  ;;  %p121_p1 = scmp.ne.s32.totalorder %s1062_s10, %s1058_s9 }
  0x30   : > { %1563 = sst [smem:[#allocation20_spill]] %s1609_s8  ;;  %s44_s3 = ssub.s32 %s1114_s23, %s1609_s8 }
  0x31   : > { %s1316_s25 = scalar_select %p75_p9, %s1078_s14, %s77_s7  }
  0x32   : > { %p1322_p11 = por %p1252_p6, %p115_p10  ;;  %s46_s29 = sor.u32 %s1240_s30, %s44_s3 }
  0x33   : > { %1564 = sst [smem:[#allocation21_spill]] %s1316_s25  ;;  %s102_s4 = sor.u32 %s73_s27, %s44_s3 }
  0x34   : > { %p47_p4 = scmp.eq.s32.totalorder %s46_s29, 0  ;;  %p103_p13 = scmp.eq.s32.totalorder %s102_s4, 0 }
  0x35   : > { %p122_p3 = scmp.eq.s32.totalorder %s677_s19, 7  ;;  %s1566_s12 = sadd.s32 1, %s1090_s17 }
  0x36   : > { %s1332_s2 = scalar_select %p47_p4, %s1090_s17, %s1566_s12  }
  0x37   : > { %s1335_s0 = scalar_select %p103_p13, %s1066_s11, %s105_s6  }
  0x38   : > { %1567 = sst [smem:[#allocation22_spill]] %s1332_s2  ;;  %p1337_p2 = por %p122_p3, %p121_p1 }
  0x39   : > { %s167_s5 = sand.u32 1, %s1078_s14   ;;  %s702_s20 = sshll.u32 %s1106_s21, 6 }
  0x3a   : > { %s685_s8 = sshll.u32 %s167_s5, 8  ;;  %s176_s30 = sadd.s32 %s1110_s22, %s702_s20 }
  0x3b   : > { %s171_s27 = scalar_lea.vmem [#allocation6], %s685_s8  ;;  %s688_s29 = sshll.u32 %s176_s30, 3 }
  0x3c   : > { %s181_s3 = sshll.u32 %s171_s27, 4  ;;  %s178_s19 = scalar_lea.hbm %s1532_s1, %s688_s29  ;;  %s182_s3 = int_to_ptr.vmem [resolvable:$true] %s181_s3 }
  0x3d   : > { %p746_p6 = pnand %p753_p8, %p1292_p5  ;;  %s179_s6 = sshll.u32 %s178_s19, 4  ;;  %s180_s6 = int_to_ptr.hbm [resolvable:$true] %s179_s6 }
  0x3e   : > { %s168_s12 = scalar_lea.sflag [#allocation7], %s167_s5  ;;  %s1123_s2 = smov 128  }
  0x3f   : > { %s1124_s17 = smov 8   ;;  %s1569_s25 = smov 256  }
  0x40   : > { %748 = dma.hbm_to_vmem [thread:$0]  (!%p746_p6), %s180_s6, 4096, %s182_s3, %s168_s12, %s1569_s25, %s1123_s2, %s1124_s17  }
  0x41   : > { %193 = sbr.rel (%p1276_p12) target bundleno = 373 (0x175), region = 28  ;;  %s195_s8 = sand.u32 (!%p1276_p12), 1, %s1086_s16  }
  0x42   : > { %s690_s30 = sshll.u32 (!%p1276_p12), %s195_s8, 8  ;;  %s196_s27 = scalar_lea.sflag (!%p1276_p12), [#allocation4], %s195_s8 }
  0x43   : > { %s1355_s23 = scalar_lea.vmem (!%p1276_p12), [#allocation3], %s690_s30 }
  0x46   : > { %1045 = dma.done.wait (%p1258_p7), %s196_s27, 4096  }
  0x47   : > { %1047 = vsyncadd (%p1258_p7), %s196_s27, 4294963200  ;;  %s205_s26 = sand.u32 1, %s1074_s13  }
  0x48   : > { %s691_s5 = sshll.u32 %s205_s26, 8  ;;  %s206_s17 = scalar_lea.sflag [#allocation7], %s205_s26 }
  0x49   : > { %s1362_s2 = scalar_lea.vmem [#allocation6], %s691_s5 }
  0x4a   : > { %1049 = dma.done.wait (%p1306_p0), %s206_s17, 4096  }
  0x4b   : > { %1051 = vsyncadd (%p1306_p0), %s206_s17, 4294963200  ;;  %s233_s18 = sand.u32 1, %s1062_s10   ;;  %s1571_s29 = sld [smem:[#allocation13_spill]] }
  0x4c   : > { %s692_s25 = sshll.u32 %s233_s18, 7 }
  0x4d   : > { %s1371_s3 = scalar_lea.vmem [#allocation8], %s692_s25 }
  0x51   : > { %p693_p7 = scmp.ne.s32.totalorder %s1571_s29, 0 }
  0x53   : > { %243 = sbr.rel (%p693_p7) target bundleno = 105 (0x69), region = 40 }
  0x58   : > { %v1125_v0 = vmov 0.0  }
  0x59   : > { %244 = vst [vmem:[#allocation2 + $0x30] sm:$0xff] %v1125_v0 }
  0x5a   : > { %245 = vst [vmem:[#allocation2] sm:$0xff] %v1125_v0 }
  0x5b   : > { %246 = vst [vmem:[#allocation2 + $0x58] sm:$0xff] %v1125_v0 }
  0x5c   : > { %247 = vst [vmem:[#allocation2 + $0x18] sm:$0xff] %v1125_v0 }
  0x5d   : > { %248 = vst [vmem:[#allocation2 + $0x50] sm:$0xff] %v1125_v0 }
  0x5e   : > { %249 = vst [vmem:[#allocation2 + $0x68] sm:$0xff] %v1125_v0 }
  0x5f   : > { %250 = vst [vmem:[#allocation2 + $0x8] sm:$0xff] %v1125_v0 }
  0x60   : > { %251 = vst [vmem:[#allocation2 + $0x48] sm:$0xff] %v1125_v0 }
  0x61   : > { %252 = vst [vmem:[#allocation2 + $0x40] sm:$0xff] %v1125_v0 }
  0x62   : > { %253 = vst [vmem:[#allocation2 + $0x20] sm:$0xff] %v1125_v0 }
  0x63   : > { %254 = vst [vmem:[#allocation2 + $0x10] sm:$0xff] %v1125_v0 }
  0x64   : > { %255 = vst [vmem:[#allocation2 + $0x38] sm:$0xff] %v1125_v0 }
  0x65   : > { %256 = vst [vmem:[#allocation2 + $0x60] sm:$0xff] %v1125_v0 }
  0x66   : > { %257 = vst [vmem:[#allocation2 + $0x70] sm:$0xff] %v1125_v0 }
  0x67   : > { %258 = vst [vmem:[#allocation2 + $0x78] sm:$0xff] %v1125_v0 }
  0x68   : > { %259 = vst [vmem:[#allocation2 + $0x28] sm:$0xff] %v1125_v0 }
  0x69 PF: > { %v323_v1 = vld [vmem:[%s1362_s2 + $0x78] sm:$0xff]  ;;  %v322_v3 = vld [vmem:[%s1362_s2 + $0x70] sm:$0xff]  ;;  %v321_v5 = vld [vmem:[%s1362_s2 + $0x68] sm:$0xff]  ;;  %s1572_s15 = sld [smem:[#allocation13_spill]] }
  0x6a   : > { %v339_v2 = vld [vmem:[%s1362_s2 + $0xf8] sm:$0xff]  ;;  %704 = vmatpush.msra.mxu2 %v323_v1  ;;  %v338_v4 = vld [vmem:[%s1362_s2 + $0xf0] sm:$0xff]  ;;  %v337_v6 = vld [vmem:[%s1362_s2 + $0xe8] sm:$0xff]  ;;  %340 = vmatpush.msra.mxu0 %v323_v1 }
  0x6b   : > { %720 = vmatpush.msra.mxu3 %v339_v2  ;;  %405 = vmatpush.msra.mxu1 %v339_v2  ;;  %v320_v7 = vld [vmem:[%s1362_s2 + $0x60] sm:$0xff]  ;;  %v319_v9 = vld [vmem:[%s1362_s2 + $0x58] sm:$0xff]  ;;  %v318_v11 = vld [vmem:[%s1362_s2 + $0x50] sm:$0xff] }
  0x6c   : > { %705 = vmatpush.msra.mxu2 %v322_v3  ;;  %v336_v8 = vld [vmem:[%s1362_s2 + $0xe0] sm:$0xff]  ;;  %341 = vmatpush.msra.mxu0 %v322_v3  ;;  %v335_v10 = vld [vmem:[%s1362_s2 + $0xd8] sm:$0xff]  ;;  %v334_v12 = vld [vmem:[%s1362_s2 + $0xd0] sm:$0xff] }
  0x6d   : > { %721 = vmatpush.msra.mxu3 %v338_v4  ;;  %406 = vmatpush.msra.mxu1 %v338_v4  ;;  %v317_v13 = vld [vmem:[%s1362_s2 + $0x48] sm:$0xff]  ;;  %v316_v15 = vld [vmem:[%s1362_s2 + $0x40] sm:$0xff]  ;;  %v315_v17 = vld [vmem:[%s1362_s2 + $0x38] sm:$0xff] }
  0x6e   : > { %706 = vmatpush.msra.mxu2 %v321_v5  ;;  %342 = vmatpush.msra.mxu0 %v321_v5  ;;  %v333_v14 = vld [vmem:[%s1362_s2 + $0xc8] sm:$0xff]  ;;  %v332_v16 = vld [vmem:[%s1362_s2 + $0xc0] sm:$0xff]  ;;  %v331_v18 = vld [vmem:[%s1362_s2 + $0xb8] sm:$0xff] }
  0x6f   : > { %722 = vmatpush.msra.mxu3 %v337_v6  ;;  %407 = vmatpush.msra.mxu1 %v337_v6  ;;  %v314_v19 = vld [vmem:[%s1362_s2 + $0x30] sm:$0xff]  ;;  %v313_v21 = vld [vmem:[%s1362_s2 + $0x28] sm:$0xff]  ;;  %v312_v23 = vld [vmem:[%s1362_s2 + $0x20] sm:$0xff]  ;;  %p694_p8 = scmp.ne.s32.totalorder %s1572_s15, 1 }
  0x70   : > { %707 = vmatpush.msra.mxu2 %v320_v7  ;;  %343 = vmatpush.msra.mxu0 %v320_v7  ;;  %v330_v20 = vld [vmem:[%s1362_s2 + $0xb0] sm:$0xff]  ;;  %v329_v22 = vld [vmem:[%s1362_s2 + $0xa8] sm:$0xff]  ;;  %v328_v24 = vld [vmem:[%s1362_s2 + $0xa0] sm:$0xff] }
  0x71   : > { %723 = vmatpush.msra.mxu3 %v336_v8  ;;  %408 = vmatpush.msra.mxu1 %v336_v8  ;;  %v311_v25 = vld [vmem:[%s1362_s2 + $0x18] sm:$0xff]  ;;  %v310_v27 = vld [vmem:[%s1362_s2 + $0x10] sm:$0xff]  ;;  %v309_v29 = vld [vmem:[%s1362_s2 + $0x8] sm:$0xff] }
  0x72   : > { %708 = vmatpush.msra.mxu2 %v319_v9  ;;  %344 = vmatpush.msra.mxu0 %v319_v9  ;;  %v327_v26 = vld [vmem:[%s1362_s2 + $0x98] sm:$0xff]  ;;  %v326_v28 = vld [vmem:[%s1362_s2 + $0x90] sm:$0xff]  ;;  %v325_v30 = vld [vmem:[%s1362_s2 + $0x88] sm:$0xff] }
  0x73   : > { %724 = vmatpush.msra.mxu3 %v335_v10  ;;  %409 = vmatpush.msra.mxu1 %v335_v10  ;;  %v308_v31 = vld [vmem:[%s1362_s2] sm:$0xff]  ;;  %v293_v34 = vld [vmem:[%s1355_s23 + $0x88] sm:$0xff]  ;;  %v294_v37 = vld [vmem:[%s1355_s23 + $0x90] sm:$0xff] }
  0x74   : > { %709 = vmatpush.msra.mxu2 %v318_v11  ;;  %345 = vmatpush.msra.mxu0 %v318_v11  ;;  %v324_v32 = vld [vmem:[%s1362_s2 + $0x80] sm:$0xff]  ;;  %v277_v36 = vld [vmem:[%s1355_s23 + $0x8] sm:$0xff]  ;;  %v295_v38 = vld [vmem:[%s1355_s23 + $0x98] sm:$0xff] }
  0x75   : > { %725 = vmatpush.msra.mxu3 %v334_v12  ;;  %410 = vmatpush.msra.mxu1 %v334_v12  ;;  %v292_v33 = vld [vmem:[%s1355_s23 + $0x80] sm:$0xff]  ;;  %v278_v39 = vld [vmem:[%s1355_s23 + $0x10] sm:$0xff]  ;;  %v279_v40 = vld [vmem:[%s1355_s23 + $0x18] sm:$0xff] }
  0x76   : > { %710 = vmatpush.msra.mxu2 %v317_v13  ;;  %346 = vmatpush.msra.mxu0 %v317_v13  ;;  %v276_v35 = vld [vmem:[%s1355_s23] sm:$0xff]  ;;  %v297_v42 = vld [vmem:[%s1355_s23 + $0xa8] sm:$0xff]  ;;  %v298_v45 = vld [vmem:[%s1355_s23 + $0xb0] sm:$0xff] }
  0x77   : > { %726 = vmatpush.msra.mxu3 %v333_v14  ;;  %411 = vmatpush.msra.mxu1 %v333_v14  ;;  %v296_v41 = vld [vmem:[%s1355_s23 + $0xa0] sm:$0xff]  ;;  %v281_v44 = vld [vmem:[%s1355_s23 + $0x28] sm:$0xff]  ;;  %v299_v46 = vld [vmem:[%s1355_s23 + $0xb8] sm:$0xff] }
  0x78   : > { %711 = vmatpush.msra.mxu2 %v316_v15  ;;  %347 = vmatpush.msra.mxu0 %v316_v15  ;;  %v280_v43 = vld [vmem:[%s1355_s23 + $0x20] sm:$0xff]  ;;  %v282_v47 = vld [vmem:[%s1355_s23 + $0x30] sm:$0xff]  ;;  %v283_v48 = vld [vmem:[%s1355_s23 + $0x38] sm:$0xff] }
  0x79   : > { %727 = vmatpush.msra.mxu3 %v332_v16  ;;  %412 = vmatpush.msra.mxu1 %v332_v16  ;;  %v300_v49 = vld [vmem:[%s1355_s23 + $0xc0] sm:$0xff]  ;;  %v301_v50 = vld [vmem:[%s1355_s23 + $0xc8] sm:$0xff]  ;;  %v302_v53 = vld [vmem:[%s1355_s23 + $0xd0] sm:$0xff] }
  0x7a   : > { %712 = vmatpush.msra.mxu2 %v315_v17  ;;  %348 = vmatpush.msra.mxu0 %v315_v17  ;;  %v284_v51 = vld [vmem:[%s1355_s23 + $0x40] sm:$0xff]  ;;  %v285_v52 = vld [vmem:[%s1355_s23 + $0x48] sm:$0xff]  ;;  %v303_v54 = vld [vmem:[%s1355_s23 + $0xd8] sm:$0xff] }
  0x7b   : > { %728 = vmatpush.msra.mxu3 %v331_v18  ;;  %413 = vmatpush.msra.mxu1 %v331_v18  ;;  %v286_v55 = vld [vmem:[%s1355_s23 + $0x50] sm:$0xff]  ;;  %v287_v56 = vld [vmem:[%s1355_s23 + $0x58] sm:$0xff]  ;;  %v304_v57 = vld [vmem:[%s1355_s23 + $0xe0] sm:$0xff] }
  0x7c   : > { %713 = vmatpush.msra.mxu2 %v314_v19  ;;  %349 = vmatpush.msra.mxu0 %v314_v19  ;;  %v305_v58 = vld [vmem:[%s1355_s23 + $0xe8] sm:$0xff]  ;;  %v288_v59 = vld [vmem:[%s1355_s23 + $0x60] sm:$0xff]  ;;  %v306_v61 = vld [vmem:[%s1355_s23 + $0xf0] sm:$0xff] }
  0x7d   : > { %729 = vmatpush.msra.mxu3 %v330_v20  ;;  %414 = vmatpush.msra.mxu1 %v330_v20  ;;  %v289_v60 = vld [vmem:[%s1355_s23 + $0x68] sm:$0xff]  ;;  %v307_v62 = vld [vmem:[%s1355_s23 + $0xf8] sm:$0xff]  ;;  %v290_v63 = vld [vmem:[%s1355_s23 + $0x70] sm:$0xff] }
  0x7e   : > { %714 = vmatpush.msra.mxu2 %v313_v21  ;;  %350 = vmatpush.msra.mxu0 %v313_v21  ;;  %v291_v0 = vld [vmem:[%s1355_s23 + $0x78] sm:$0xff]  ;;  %v260_v2 = vld [vmem:[#allocation2 + $0x30] sm:$0xff]  ;;  %v268_v7 = vld [vmem:[#allocation2 + $0x40] sm:$0xff] }
  0x7f   : > { %730 = vmatpush.msra.mxu3 %v329_v22  ;;  %415 = vmatpush.msra.mxu1 %v329_v22  ;;  %v261_v12 = vld [vmem:[#allocation2] sm:$0xff]  ;;  %v262_v22 = vld [vmem:[#allocation2 + $0x58] sm:$0xff] }
  0x80   : > { %715 = vmatpush.msra.mxu2 %v312_v23  ;;  %351 = vmatpush.msra.mxu0 %v312_v23  ;;  %v269_v17 = vld [vmem:[#allocation2 + $0x20] sm:$0xff] }
  0x81   : > { %731 = vmatpush.msra.mxu3 %v328_v24  ;;  %416 = vmatpush.msra.mxu1 %v328_v24 }
  0x82   : > { %716 = vmatpush.msra.mxu2 %v311_v25  ;;  %352 = vmatpush.msra.mxu0 %v311_v25 }
  0x83   : > { %732 = vmatpush.msra.mxu3 %v327_v26  ;;  %417 = vmatpush.msra.mxu1 %v327_v26 }
  0x84   : > { %717 = vmatpush.msra.mxu2 %v310_v27  ;;  %353 = vmatpush.msra.mxu0 %v310_v27  ;;  %v270_v27 = vld [vmem:[#allocation2 + $0x10] sm:$0xff] }
  0x85   : > { %733 = vmatpush.msra.mxu3 %v326_v28  ;;  %418 = vmatpush.msra.mxu1 %v326_v28 }
  0x86   : > { %718 = vmatpush.msra.mxu2 %v309_v29  ;;  %354 = vmatpush.msra.mxu0 %v309_v29 }
  0x87   : > { %734 = vmatpush.msra.mxu3 %v325_v30  ;;  %419 = vmatpush.msra.mxu1 %v325_v30 }
  0x88   : > { %719 = vmatpush.msra.mxu2 %v308_v31  ;;  %355 = vmatpush.msra.mxu0 %v308_v31 }
  0x89   : > { %735 = vmatpush.msra.mxu3 %v324_v32  ;;  %380 = vmatmul.f32.vlgmr.msra.gmra.mxu2 %v292_v33 }
  0x8a   : > { %445 = vmatmul.f32.vlgmr.msra.gmra.mxu3 %v293_v34  ;;  %420 = vmatpush.msra.mxu1 %v324_v32  ;;  %v263_v32 = vld [vmem:[#allocation2 + $0x18] sm:$0xff] }
  0x8b   : > { %356 = vmatmul.f32.vlgmr.msra.gmra.mxu0 %v276_v35  ;;  %421 = vmatmul.f32.vlgmr.msra.gmra.mxu1 %v277_v36 }
  0x91   : > { %383 = vmatmul.f32.gmra.mxu2 %v294_v37  ;;  %v271_v37 = vld [vmem:[#allocation2 + $0x38] sm:$0xff] }
  0x92   : > { %448 = vmatmul.f32.gmra.mxu3 %v295_v38 }
  0x93   : > { %359 = vmatmul.f32.gmra.mxu0 %v278_v39  ;;  %424 = vmatmul.f32.gmra.mxu1 %v279_v40 }
  0x99   : > { %386 = vmatmul.f32.gmra.mxu2 %v296_v41 }
  0x9a   : > { %451 = vmatmul.f32.gmra.mxu3 %v297_v42  ;;  %v264_v42 = vld [vmem:[#allocation2 + $0x50] sm:$0xff] }
  0x9b   : > { %362 = vmatmul.f32.gmra.mxu0 %v280_v43  ;;  %427 = vmatmul.f32.gmra.mxu1 %v281_v44 }
  0xa1   : > { %389 = vmatmul.f32.gmra.mxu2 %v298_v45 }
  0xa2   : > { %454 = vmatmul.f32.gmra.mxu3 %v299_v46 }
  0xa3   : > { %365 = vmatmul.f32.gmra.mxu0 %v282_v47  ;;  %430 = vmatmul.f32.gmra.mxu1 %v283_v48  ;;  %v272_v47 = vld [vmem:[#allocation2 + $0x60] sm:$0xff] }
  0xa9   : > { %392 = vmatmul.f32.gmra.mxu2 %v300_v49 }
  0xaa   : > { %457 = vmatmul.f32.gmra.mxu3 %v301_v50 }
  0xab   : > { %368 = vmatmul.f32.gmra.mxu0 %v284_v51  ;;  %433 = vmatmul.f32.gmra.mxu1 %v285_v52  ;;  %v265_v52 = vld [vmem:[#allocation2 + $0x68] sm:$0xff] }
  0xb1   : > { %395 = vmatmul.f32.gmra.mxu2 %v302_v53 }
  0xb2   : > { %460 = vmatmul.f32.gmra.mxu3 %v303_v54 }
  0xb3   : > { %371 = vmatmul.f32.gmra.mxu0 %v286_v55  ;;  %436 = vmatmul.f32.gmra.mxu1 %v287_v56 }
  0xb9   : > { %398 = vmatmul.f32.gmra.mxu2 %v304_v57  ;;  %v273_v57 = vld [vmem:[#allocation2 + $0x70] sm:$0xff] }
  0xba   : > { %463 = vmatmul.f32.gmra.mxu3 %v305_v58 }
  0xbb   : > { %374 = vmatmul.f32.gmra.mxu0 %v288_v59  ;;  %439 = vmatmul.f32.gmra.mxu1 %v289_v60 }
  0xc1   : > { %401 = vmatmul.f32.gmra.mxu2 %v306_v61 }
  0xc2   : > { %466 = vmatmul.f32.gmra.mxu3 %v307_v62  ;;  %v266_v62 = vld [vmem:[#allocation2 + $0x8] sm:$0xff] }
  0xc3   : > { %377 = vmatmul.f32.gmra.mxu0 %v290_v63  ;;  %442 = vmatmul.f32.gmra.mxu1 %v291_v0 }
 0x108   : > { %v357_v1 = vpop.f32.mrf.mxu0  ;;  %v422_v3 = vpop.f32.mrf.mxu1 }
 0x109   : > { %v423_v4 = vadd.f32 %v422_v3, %v357_v1  ;;  %v274_v3 = vld [vmem:[#allocation2 + $0x78] sm:$0xff] }
 0x10b   : > { %v470_v5 = vadd.f32 %v423_v4, %v260_v2 }
 0x10c   : > { %v381_v6 = vpop.f32.mrf.mxu2 }
 0x10d   : > { %v446_v8 = vpop.f32.mrf.mxu3  ;;  %486 = vst [vmem:[#allocation2 + $0x30] sm:$0xff] %v470_v5 }
 0x10e   : > { %v447_v9 = vadd.f32 %v446_v8, %v381_v6  ;;  %v267_v8 = vld [vmem:[#allocation2 + $0x48] sm:$0xff] }
 0x110   : > { %v478_v10 = vadd.f32 %v447_v9, %v268_v7  ;;  %v360_v11 = vpop.f32.mrf.mxu0  ;;  %v425_v13 = vpop.f32.mrf.mxu1 }
 0x111   : > { %v426_v14 = vadd.f32 %v425_v13, %v360_v11  ;;  %v275_v13 = vld [vmem:[#allocation2 + $0x28] sm:$0xff] }
 0x112   : > { %494 = vst [vmem:[#allocation2 + $0x40] sm:$0xff] %v478_v10 }
 0x113   : > { %v471_v15 = vadd.f32 %v426_v14, %v261_v12 }
 0x114   : > { %v384_v16 = vpop.f32.mrf.mxu2 }
 0x115   : > { %v449_v18 = vpop.f32.mrf.mxu3  ;;  %487 = vst [vmem:[#allocation2] sm:$0xff] %v471_v15 }
 0x116   : > { %v450_v19 = vadd.f32 %v449_v18, %v384_v16 }
 0x118   : > { %v479_v20 = vadd.f32 %v450_v19, %v269_v17  ;;  %v363_v21 = vpop.f32.mrf.mxu0  ;;  %v428_v23 = vpop.f32.mrf.mxu1 }
 0x119   : > { %v429_v24 = vadd.f32 %v428_v23, %v363_v21 }
 0x11a   : > { %495 = vst [vmem:[#allocation2 + $0x20] sm:$0xff] %v479_v20 }
 0x11b   : > { %v472_v25 = vadd.f32 %v429_v24, %v262_v22 }
 0x11c   : > { %v387_v26 = vpop.f32.mrf.mxu2 }
 0x11d   : > { %v452_v28 = vpop.f32.mrf.mxu3  ;;  %488 = vst [vmem:[#allocation2 + $0x58] sm:$0xff] %v472_v25 }
 0x11e   : > { %v453_v29 = vadd.f32 %v452_v28, %v387_v26 }
 0x120   : > { %v480_v30 = vadd.f32 %v453_v29, %v270_v27  ;;  %v366_v31 = vpop.f32.mrf.mxu0  ;;  %v431_v33 = vpop.f32.mrf.mxu1 }
 0x121   : > { %v432_v34 = vadd.f32 %v431_v33, %v366_v31 }
 0x122   : > { %496 = vst [vmem:[#allocation2 + $0x10] sm:$0xff] %v480_v30 }
 0x123   : > { %v473_v35 = vadd.f32 %v432_v34, %v263_v32 }
 0x124   : > { %v390_v36 = vpop.f32.mrf.mxu2 }
 0x125   : > { %v455_v38 = vpop.f32.mrf.mxu3  ;;  %489 = vst [vmem:[#allocation2 + $0x18] sm:$0xff] %v473_v35 }
 0x126   : > { %v456_v39 = vadd.f32 %v455_v38, %v390_v36 }
 0x128   : > { %v481_v40 = vadd.f32 %v456_v39, %v271_v37  ;;  %v369_v41 = vpop.f32.mrf.mxu0  ;;  %v434_v43 = vpop.f32.mrf.mxu1 }
 0x129   : > { %v435_v44 = vadd.f32 %v434_v43, %v369_v41 }
 0x12a   : > { %497 = vst [vmem:[#allocation2 + $0x38] sm:$0xff] %v481_v40 }
 0x12b   : > { %v474_v45 = vadd.f32 %v435_v44, %v264_v42 }
 0x12c   : > { %v393_v46 = vpop.f32.mrf.mxu2 }
 0x12d   : > { %v458_v48 = vpop.f32.mrf.mxu3  ;;  %490 = vst [vmem:[#allocation2 + $0x50] sm:$0xff] %v474_v45 }
 0x12e   : > { %v459_v49 = vadd.f32 %v458_v48, %v393_v46 }
 0x130   : > { %v482_v50 = vadd.f32 %v459_v49, %v272_v47  ;;  %v372_v51 = vpop.f32.mrf.mxu0  ;;  %v437_v53 = vpop.f32.mrf.mxu1 }
 0x131   : > { %v438_v54 = vadd.f32 %v437_v53, %v372_v51 }
 0x132   : > { %498 = vst [vmem:[#allocation2 + $0x60] sm:$0xff] %v482_v50 }
 0x133   : > { %v475_v55 = vadd.f32 %v438_v54, %v265_v52 }
 0x134   : > { %v396_v56 = vpop.f32.mrf.mxu2 }
 0x135   : > { %v461_v58 = vpop.f32.mrf.mxu3  ;;  %491 = vst [vmem:[#allocation2 + $0x68] sm:$0xff] %v475_v55 }
 0x136   : > { %v462_v59 = vadd.f32 %v461_v58, %v396_v56 }
 0x138   : > { %v483_v60 = vadd.f32 %v462_v59, %v273_v57  ;;  %v375_v61 = vpop.f32.mrf.mxu0  ;;  %v440_v63 = vpop.f32.mrf.mxu1 }
 0x139   : > { %v441_v0 = vadd.f32 %v440_v63, %v375_v61 }
 0x13a   : > { %499 = vst [vmem:[#allocation2 + $0x70] sm:$0xff] %v483_v60 }
 0x13b   : > { %v476_v1 = vadd.f32 %v441_v0, %v266_v62 }
 0x13c   : > { %v399_v2 = vpop.f32.mrf.mxu2 }
 0x13d   : > { %v464_v4 = vpop.f32.mrf.mxu3  ;;  %492 = vst [vmem:[#allocation2 + $0x8] sm:$0xff] %v476_v1 }
 0x13e   : > { %v465_v5 = vadd.f32 %v464_v4, %v399_v2 }
 0x140   : > { %v484_v6 = vadd.f32 %v465_v5, %v274_v3  ;;  %v378_v7 = vpop.f32.mrf.mxu0  ;;  %v443_v9 = vpop.f32.mrf.mxu1 }
 0x141   : > { %v444_v10 = vadd.f32 %v443_v9, %v378_v7 }
 0x142   : > { %500 = vst [vmem:[#allocation2 + $0x78] sm:$0xff] %v484_v6 }
 0x143   : > { %v477_v11 = vadd.f32 %v444_v10, %v267_v8 }
 0x144   : > { %v402_v12 = vpop.f32.mrf.mxu2 }
 0x145   : > { %v467_v14 = vpop.f32.mrf.mxu3  ;;  %493 = vst [vmem:[#allocation2 + $0x48] sm:$0xff] %v477_v11 }
 0x146   : > { %v468_v15 = vadd.f32 %v467_v14, %v402_v12  ;;  %505 = sbr.rel (%p694_p8) target bundleno = 348 (0x15c), region = 44 }
 0x148   : > { %v485_v16 = vadd.f32 %v468_v15, %v275_v13 }
 0x14a   : > { %501 = vst [vmem:[#allocation2 + $0x28] sm:$0xff] %v485_v16 }
 0x14b   : > { %v506_v17 = vld [vmem:[#allocation2 + $0x30] sm:$0xff]  ;;  %v507_v18 = vld [vmem:[#allocation2] sm:$0xff]  ;;  %v508_v19 = vld [vmem:[#allocation2 + $0x58] sm:$0xff] }
 0x14c   : > { %522 = vst [vmem:[%s1371_s3] sm:$0xff] %v506_v17  ;;  %v509_v20 = vld [vmem:[#allocation2 + $0x18] sm:$0xff]  ;;  %v510_v21 = vld [vmem:[#allocation2 + $0x50] sm:$0xff]  ;;  %v511_v22 = vld [vmem:[#allocation2 + $0x68] sm:$0xff] }
 0x14d   : > { %523 = vst [vmem:[%s1371_s3 + $0x8] sm:$0xff] %v507_v18  ;;  %v512_v23 = vld [vmem:[#allocation2 + $0x8] sm:$0xff]  ;;  %v514_v25 = vld [vmem:[#allocation2 + $0x40] sm:$0xff]  ;;  %v516_v27 = vld [vmem:[#allocation2 + $0x10] sm:$0xff] }
 0x14e   : > { %524 = vst [vmem:[%s1371_s3 + $0x10] sm:$0xff] %v508_v19  ;;  %v513_v24 = vld [vmem:[#allocation2 + $0x48] sm:$0xff]  ;;  %v515_v26 = vld [vmem:[#allocation2 + $0x20] sm:$0xff]  ;;  %v517_v28 = vld [vmem:[#allocation2 + $0x38] sm:$0xff] }
 0x14f   : > { %525 = vst [vmem:[%s1371_s3 + $0x18] sm:$0xff] %v509_v20  ;;  %v518_v29 = vld [vmem:[#allocation2 + $0x60] sm:$0xff]  ;;  %v519_v30 = vld [vmem:[#allocation2 + $0x70] sm:$0xff]  ;;  %v520_v31 = vld [vmem:[#allocation2 + $0x78] sm:$0xff] }
 0x150   : > { %526 = vst [vmem:[%s1371_s3 + $0x20] sm:$0xff] %v510_v21 }
 0x151   : > { %527 = vst [vmem:[%s1371_s3 + $0x28] sm:$0xff] %v511_v22  ;;  %v521_v32 = vld [vmem:[#allocation2 + $0x28] sm:$0xff] }
 0x152   : > { %528 = vst [vmem:[%s1371_s3 + $0x30] sm:$0xff] %v512_v23 }
 0x153   : > { %529 = vst [vmem:[%s1371_s3 + $0x38] sm:$0xff] %v513_v24 }
 0x154   : > { %530 = vst [vmem:[%s1371_s3 + $0x40] sm:$0xff] %v514_v25 }
 0x155   : > { %531 = vst [vmem:[%s1371_s3 + $0x48] sm:$0xff] %v515_v26 }
 0x156   : > { %532 = vst [vmem:[%s1371_s3 + $0x50] sm:$0xff] %v516_v27 }
 0x157   : > { %533 = vst [vmem:[%s1371_s3 + $0x58] sm:$0xff] %v517_v28 }
 0x158   : > { %534 = vst [vmem:[%s1371_s3 + $0x60] sm:$0xff] %v518_v29 }
 0x159   : > { %535 = vst [vmem:[%s1371_s3 + $0x68] sm:$0xff] %v519_v30 }
 0x15a   : > { %536 = vst [vmem:[%s1371_s3 + $0x70] sm:$0xff] %v520_v31 }
 0x15b   : > { %537 = vst [vmem:[%s1371_s3 + $0x78] sm:$0xff] %v521_v32 }
 0x15c PF: > { %s1573_s4 = sld [smem:[#allocation15_spill]]  ;;  %s553_s20 = sshll.u32 %s1371_s3, 4  ;;  %s554_s20 = int_to_ptr.vmem [resolvable:$true] %s553_s20 }
 0x15d   : > { %s1574_s19 = sld [smem:[#allocation14_spill]]  ;;  %s539_s2 = scalar_lea.sflag [#allocation5], %s233_s18 }
 0x15e   : > { %s1575_s23 = sld [smem:[#allocation24_spill]] }
 0x162   : > { %s703_s6 = sshll.u32 %s1573_s4, 5 }
 0x163   : > { %s550_s12 = sadd.s32 %s1574_s19, %s703_s6 }
 0x164   : > { %s698_s8 = sshll.u32 %s550_s12, 3  ;;  %s1576_s26 = smov %s1575_s23 }
 0x165   : > { %s552_s5 = scalar_lea.hbm %s1575_s23, %s698_s8  ;;  %s972_s3 = scalar_lea.hbm %s1576_s26, 512 }
 0x166   : > { %s555_s17 = sshll.u32 %s552_s5, 4  ;;  %s556_s17 = int_to_ptr.hbm [resolvable:$true] %s555_s17 }
 0x167   : > { %s966_s25 = sshra.s32 %s556_s17, 4  ;;  %s967_s25 = int_to_ptr.hbm [resolvable:$true] %s966_s25 }
 0x168   : > { %s968_s29 = scalar_lea.hbm %s967_s25, 128  ;;  %p973_p9 = scmp.lt.s32.totalorder %s967_s25, %s1576_s26 }
 0x169   : > { %p969_p12 = scmp.ne.s32.totalorder %s967_s25, %s968_s29  ;;  %p974_p10 = scmp.lt.s32.totalorder %s972_s3, %s968_s29 }
 0x16b   : > { %p970_p5 = pnand %p969_p12, %p1322_p11  ;;  %p975_p4 = por %p974_p10, %p973_p9 }
 0x16d   : > { %p971_p0 = pneg %p970_p5 }
 0x16f   : > { %p976_p13 = pnand %p975_p4, %p971_p0 }
 0x171   : > { %979 = shalt.err (!%p976_p13)
}
 0x172   : > { %s1126_s18 = smov 128   ;;  %s1127_s12 = smov 256  }
 0x173   : > { %s1128_s8 = smov 8  }
 0x174   : > { %740 = dma.vmem_to_hbm [thread:$0]  (%p1322_p11), %s554_s20, 2048, %s556_s17, %s539_s2, %s1126_s18, %s1127_s12, %s1128_s8  }
 0x175 PF: > { %p754_p1 = scmp.ge.s32.totalorder %s1118_s24, 2  ;;  %s570_s30 = sand.u32 1, %s1058_s9  }
 0x176   : > { %s571_s27 = scalar_lea.sflag [#allocation5], %s570_s30 }
 0x177   : > { %p750_p3 = pnand %p754_p1, %p1337_p2 }
 0x179   : > { %p751_p6 = pneg %p750_p3 }
 0x17b   : > { %1053 = dma.done.wait (%p751_p6), %s571_s27, 2048  }
 0x17c   : > { %1055 = vsyncadd (%p751_p6), %s571_s27, 4294965248  ;;  %s21_s24 = sadd.s32 1, %s1118_s24   ;;  %s1578_s28 = sld [smem:[#allocation21_spill]] }
 0x17d   : > { %p1478_p7 = scmp.ge.s32.totalorder %s21_s24, 10   ;;  %s1579_s20 = sld [smem:[#allocation12_spill]] }
 0x17e   : > { %s1580_s17 = sld [smem:[#allocation22_spill]]  ;;  %s1585_s9 = smov %s1062_s10 }
 0x17f   : > { %s1581_s7 = sld [smem:[#allocation16_spill]]  ;;  %s1587_s10 = smov %s1066_s11 }
 0x180   : > { %s1582_s5 = sld [smem:[#allocation17_spill]]  ;;  %s1588_s11 = smov %s1335_s0 }
 0x181   : > { %s1583_s2 = sld [smem:[#allocation19_spill]]  ;;  %s1589_s12 = smov %s1074_s13 }
 0x182   : > { %s1584_s25 = sld [smem:[#allocation20_spill]]  ;;  %s1590_s13 = smov %s1078_s14 }
 0x183   : > { %s1591_s14 = smov %s1578_s28  ;;  %s1592_s15 = smov %s1086_s16 }
 0x184   : > { %s1593_s16 = smov %s1579_s20  ;;  %s1594_s18 = smov %s1106_s21 }
 0x185   : > { %s1595_s19 = smov %s1110_s22  ;;  %s1596_s20 = smov %s1581_s7 }
 0x186   : > { %s1597_s21 = smov %s1582_s5  ;;  %20 = sbr.rel (!%p1478_p7) target bundleno = 16 (0x10), region = 94 }
 0x187   : > { %s1598_s22 = smov %s1583_s2 }
 0x188   : > { %s1599_s23 = smov %s1584_s25 }
 0x18b   :  { %577 = vsyncpa [#allocation4], 1 }
 0x18c   :  { %579 = vsyncpa [#allocation4 + $0x1], 1 }
 0x18d   :  { %580 = vsyncpa [#allocation7], 1 }
 0x18e   :  { %582 = vsyncpa [#allocation7 + $0x1], 1 }
 0x18f   :  { %583 = vsyncpa [#allocation5], 1 }
 0x190   :  { %585 = vsyncpa [#allocation5 + $0x1], 1 }

</bundles_post_ra>
